<compile_context>
chip_gen: v5e
topology: v5e:2x2
jax: 0.10.0
libtpu: 0.0.40
codegen_flags: <defaults>
</compile_context>

<pallas_src>
import numpy as np
import jax
import jax.numpy as jnp
from jax.experimental import pallas as pl
from jax.experimental.pallas import tpu as pltpu

_MB = 1024 * 1024


def make_kernel(k, upsample_factor=1):
    """Same as the PyTorch make_kernel: 1D -> separable 2D, normalized."""
    k = np.asarray(k, dtype=np.float32)
    if k.ndim == 1:
        k = k[None, :] * k[:, None]
    k = k / k.sum()
    if upsample_factor > 1:
        k = k * (upsample_factor ** 2)
    return k  # (4, 4) float32


def _separable_taps(kernel_1d, upsample_factor):
    """Exact 1-D factorization: taps[i] * taps[j] == k2d[i, j]."""
    k = np.asarray(kernel_1d, dtype=np.float64)
    assert k.ndim == 1, "Blur in this module always uses a 1-D kernel ([1,3,3,1])"
    t = (k / k.sum()) * float(upsample_factor)
    return [float(v) for v in t]


# ---------------------------------------------------------------------------
# Kernel body
# ---------------------------------------------------------------------------
def _make_blur_kernel_fn(taps, H, W, pad_top, pad_bot, pad_w):
    K = len(taps)
    Hp = H + pad_top + pad_bot
    Ho = Hp - K + 1
    Wo = W + 2 * pad_w - K + 1
    Wi = W - K + 1                       # W-pass interior output columns

    # Fold the leading tap into a single output scale so the folded taps are
    # [1, 3, 3, 1] (saves one vmul per vreg per pass; scale applied once).
    if abs(taps[0]) > 1e-12:
        r = [t / taps[0] for t in taps]
        out_scale = taps[0] * taps[0]
    else:  # pragma: no cover - not hit by the [1,3,3,1] kernel
        r = list(taps)
        out_scale = 1.0
    symmetric = all(abs(r[i] - r[K - 1 - i]) < 1e-12 for i in range(K))

    def _wsum(pairs):
        acc = None
        for c, v in pairs:
            term = v if c == 1.0 else c * v
            acc = term if acc is None else acc + term
        return acc

    def _tap_sum(get):
        if symmetric:
            pairs = [(r[j], get(j) + get(K - 1 - j)) for j in range(K // 2)]
            if K % 2:
                pairs.append((r[K // 2], get(K // 2)))
        else:
            pairs = [(r[j], get(j)) for j in range(K)]
        return _wsum(pairs)

    def kernel(x_ref, o_ref, tw_ref):
        # x_ref : (g, H,  W )  input tile  (W on lanes, H on sublanes)
        # o_ref : (g, Ho, Wo)  output tile
        # tw_ref: (g, Hp, Wo)  f32 W-pass scratch, zero-padded along H only
        g = x_ref.shape[0]

        def xs(col, width):
            return x_ref[:, :, col:col + width].astype(jnp.float32)

        # Zero the (tiny) padH strips; re-done every grid step so each core's
        # private scratch stays initialized under megacore sharding.
        if pad_top:
            tw_ref[:, 0:pad_top, :] = jnp.zeros((g, pad_top, Wo), jnp.float32)
        if pad_bot:
            tw_ref[:, pad_top + H:Hp, :] = jnp.zeros((g, pad_bot, Wo), jnp.float32)

        # ---- W pass: K lane-shifted taps read straight from x_ref ----
        interior = _tap_sum(lambda j: xs(j, Wi))                     # (g, H, Wi)
        tw_ref[:, pad_top:pad_top + H, pad_w:pad_w + Wi] = interior
        for c in range(pad_w):                                       # left edge
            col = _wsum([(r[j], xs(c + j - pad_w, 1))
                         for j in range(pad_w - c, K)])
            tw_ref[:, pad_top:pad_top + H, c:c + 1] = col
        for c in range(W + pad_w - K + 1, Wo):                       # right edge
            col = _wsum([(r[j], xs(c + j - pad_w, 1))
                         for j in range(0, pad_w + W - c)])
            tw_ref[:, pad_top:pad_top + H, c:c + 1] = col

        # ---- H pass: K sublane-shifted taps of the W-pass scratch ----
        acc = _tap_sum(lambda i: tw_ref[:, i:i + Ho, :])             # (g, Ho, Wo)
        if out_scale != 1.0:
            acc = out_scale * acc
        o_ref[...] = acc.astype(o_ref.dtype)

    return kernel


# ---------------------------------------------------------------------------
# VMEM / tiling policy
# ---------------------------------------------------------------------------
def _physical_vmem_bytes():
    try:
        info = pltpu.get_tpu_info()
        for name in ("vmem_capacity_bytes", "vmem_size_bytes", "vmem_bytes"):
            v = getattr(info, name, None)
            if v:
                return int(v)
    except Exception:
        pass
    return 64 * _MB          # conservative default (v7x per-TensorCore VMEM)


def _vmem_policy():
    phys = _physical_vmem_bytes()
    # <= ~56 MiB scoped on 64-MiB parts (v7x), ~96 MiB on 128-MiB parts.
    limit = min(max(phys - 8 * _MB, 16 * _MB), 96 * _MB)
    budget = max(limit - 8 * _MB, 8 * _MB)   # per-step working-set target
    return budget, limit


def _per_channel_bytes(H, W, Hp, Ho, Wo, itemsize):
    """Rough per-channel VMEM working set for one grid step."""
    return (2 * H * W * itemsize          # input block (double-buffered)
            + 2 * Ho * Wo * itemsize      # output block (double-buffered)
            + Hp * Wo * 4                 # W-pass scratch (single-buffered)
            + H * W * 4                   # W-pass interior temporary
            + 2 * Ho * Wo * 4)            # H-pass temporaries


def _pick_g_tile(BC, per_g_bytes, budget):
    """Channel-tile size (leading dim, no lane/sublane constraint).

    Prefers >= 4 grid steps (>= 2 per TensorCore under megacore sharding),
    then >= 2, then any divisor that fits.  Returns None when even a single
    channel exceeds the budget (caller falls back to H-chunking).
    """
    divisors = [d for d in range(1, BC + 1) if BC % d == 0]
    fitting = [d for d in divisors if d * per_g_bytes <= budget]
    if not fitting:
        return None
    for min_steps in (4, 2, 1):
        ok = [d for d in fitting if BC // d >= min_steps]
        if ok:
            return max(ok)
    return max(fitting)


# ---------------------------------------------------------------------------
# pallas_call wrapper + H-chunk fallback
# ---------------------------------------------------------------------------
def _blur_pallas(x3, taps, pad_top, pad_bot, pad_w, g_tile, vmem_limit):
    BC, H, W = x3.shape
    K = len(taps)
    Hp = H + pad_top + pad_bot
    Ho = Hp - K + 1
    Wo = W + 2 * pad_w - K + 1
    itemsize = jnp.dtype(x3.dtype).itemsize
    kernel = _make_blur_kernel_fn(tuple(taps), H, W, pad_top, pad_bot, pad_w)
    return pl.pallas_call(
        kernel,
        out_shape=jax.ShapeDtypeStruct((BC, Ho, Wo), x3.dtype),
        grid_spec=pltpu.PrefetchScalarGridSpec(
            num_scalar_prefetch=0,
            grid=(BC // g_tile,),
            in_specs=[pl.BlockSpec((g_tile, H, W), lambda n: (n, 0, 0))],
            out_specs=pl.BlockSpec((g_tile, Ho, Wo), lambda n: (n, 0, 0)),
            scratch_shapes=[pltpu.VMEM((g_tile, Hp, Wo), jnp.float32)],
        ),
        compiler_params=pltpu.CompilerParams(
            dimension_semantics=("parallel",),
            vmem_limit_bytes=int(vmem_limit),
        ),
        cost_estimate=pl.CostEstimate(
            flops=int(14 * BC * Ho * Wo),        # ~7 MAC-ish ops per separable pass
            transcendentals=0,
            bytes_accessed=int(BC * (H * W + Ho * Wo) * itemsize),
        ),
    )(x3)


def _blur_nchw(x3, taps, pad_top, pad_bot, pad_w, block_budget, vmem_limit):
    BC, H, W = x3.shape
    K = len(taps)
    Hp = H + pad_top + pad_bot
    Ho = Hp - K + 1
    Wo = W + 2 * pad_w - K + 1
    assert Ho > 0 and Wo > 0
    assert W >= K, "blur expects spatial width >= blur kernel size"

    itemsize = jnp.dtype(x3.dtype).itemsize
    per_g = _per_channel_bytes(H, W, Hp, Ho, Wo, itemsize)
    g_tile = _pick_g_tile(BC, per_g, block_budget)
    if g_tile is not None:
        return _blur_pallas(x3, taps, pad_top, pad_bot, pad_w, g_tile, vmem_limit)

    if Ho > 1:
        # H-chunk fallback: even a single channel's full H x W working set
        # exceeds the per-step budget (spatially huge layers).  Split OUTPUT
        # rows into chunks; each chunk re-reads its (K-1)-row input halo and
        # runs the same kernel with the chunk's effective top/bottom zero pad.
        # TODO(synk): fold this into the pallas grid with an in-kernel 3-row
        # carry so the per-chunk outputs don't need the extra concatenate.
        per_row = -(-per_g // Hp)                          # ceil
        rows_fit = max(K, int(block_budget // per_row))
        ho_c = max(1, min(rows_fit - (K - 1), Ho - 1))
        outs = []
        o0 = 0
        while o0 < Ho:
            o1 = min(Ho, o0 + ho_c)
            lo, hi = o0 - pad_top, o1 + (K - 1) - pad_top
            cpt, cpb = max(0, -lo), max(0, hi - H)
            i0, i1 = max(0, lo), min(H, hi)
            outs.append(_blur_nchw(x3[:, i0:i1, :], taps, cpt, cpb, pad_w,
                                   block_budget, vmem_limit))
            o0 = o1
        return jnp.concatenate(outs, axis=1)

    # Single output row still over budget: run anyway with one channel/step.
    return _blur_pallas(x3, taps, pad_top, pad_bot, pad_w, 1, vmem_limit)


def blur(x, kernel_1d=(1.0, 3.0, 3.0, 1.0), pad=(2, 1), upsample_factor=1,
         *, block_budget_bytes=None):
    """StyleGAN2 Blur forward.  x: (B, C, H, W) -> (B, C, Ho, Wo).

    Matches `F.conv2d(x.view(B*C,1,H,W), k2d[None,None], padding=(padH,padW))`
    with the normalized (optionally upsample-scaled) separable [1,3,3,1]
    kernel, i.e. symmetric per-axis zero padding, exactly as in the provided
    PyTorch `Blur` module.
    """
    if isinstance(pad, int):
        pad = (pad, pad)
    padH, padW = int(pad[0]), int(pad[1])
    taps = _separable_taps(kernel_1d, upsample_factor)
    K = len(taps)
    assert 0 <= padW < K and 0 <= padH < K

    B, C, H, W = x.shape
    Ho = H + 2 * padH - K + 1
    Wo = W + 2 * padW - K + 1

    budget, vmem_limit = _vmem_policy()
    if block_budget_bytes is not None:
        budget = int(block_budget_bytes)

    # Pure metadata reshape: B*C becomes the (grid-tiled) leading dim, W stays
    # on the lane axis and H on sublanes -- no HBM relayout on either side.
    x3 = x.reshape(B * C, H, W)
    out3 = _blur_nchw(x3, taps, padH, padH, padW, budget, vmem_limit)
    return out3.reshape(B, C, Ho, Wo)


# ---------------------------------------------------------------------------
# Pure-JAX reference (lax conv, cross-correlation) matching F.conv2d
# ---------------------------------------------------------------------------
def _reference_blur(x, kernel_1d=(1.0, 3.0, 3.0, 1.0), pad=(2, 1),
                    upsample_factor=1):
    if isinstance(pad, int):
        pad = (pad, pad)
    k2d = jnp.asarray(make_kernel(kernel_1d, upsample_factor))
    B, C, H, W = x.shape
    lhs = x.reshape(B * C, 1, H, W)
    rhs = k2d[None, None]  # (1, 1, 4, 4)
    out = jax.lax.conv_general_dilated(
        lhs, rhs, window_strides=(1, 1),
        padding=((pad[0], pad[0]), (pad[1], pad[1])),
        dimension_numbers=("NCHW", "OIHW", "NCHW"))
    return out.reshape(B, C, out.shape[2], out.shape[3])


if __name__ == "__main__":
    key = jax.random.PRNGKey(0)
    k1, k2 = jax.random.split(key)

    # Case 1: asymmetric pad=(2,1) with upsample scaling -- exercises the
    # W-edge partial-tap columns and the H zero strips.
    x = jax.random.normal(k1, (2, 4, 16, 16), dtype=jnp.float32)
    out = jax.block_until_ready(blur(x, kernel_1d=(1.0, 3.0, 3.0, 1.0),
                                     pad=(2, 1), upsample_factor=2))
    ref = _reference_blur(x, pad=(2, 1), upsample_factor=2)
    np.testing.assert_allclose(np.asarray(out), np.asarray(ref),
                               rtol=1e-5, atol=1e-5)

    # Case 2: the Generator's actual Blur config (ModulatedConv2dWithUpsample):
    # pad=(1, 1), upsample_factor=2, odd spatial size from the stride-2
    # transposed conv (2*h + 1).
    x2 = jax.random.normal(k2, (2, 4, 17, 17), dtype=jnp.float32)
    out2 = jax.block_until_ready(blur(x2, kernel_1d=(1.0, 3.0, 3.0, 1.0),
                                      pad=(1, 1), upsample_factor=2))
    ref2 = _reference_blur(x2, pad=(1, 1), upsample_factor=2)
    np.testing.assert_allclose(np.asarray(out2), np.asarray(ref2),
                               rtol=1e-5, atol=1e-5)

    # Case 3: force the H-chunk fallback (tiny per-step budget) to validate the
    # halo / effective-padding bookkeeping used for spatially huge layers.
    out3 = jax.block_until_ready(
        blur(x2, kernel_1d=(1.0, 3.0, 3.0, 1.0), pad=(1, 1),
             upsample_factor=2, block_budget_bytes=4096))
    np.testing.assert_allclose(np.asarray(out3), np.asarray(ref2),
                               rtol=1e-5, atol=1e-5)

    print("KERNEL_OK")
</pallas_src>

<mosaic_0001>
module attributes {stable_mosaic.version = 11 : i64} {
  func.func @kernel(%arg0: i32, %arg1: memref<2x16x16xf32, #tpu.memory_space<vmem>>, %arg2: memref<2x17x15xf32, #tpu.memory_space<vmem>>, %arg3: memref<2x20x15xf32, #tpu.memory_space<vmem>>) attributes {dimension_semantics = [#tpu.dimension_semantics<parallel>], iteration_bounds = array<i64: 4>, scalar_prefetch = 0 : i64, scratch_operands = 1 : i64, tpu.core_type = #tpu.core_type<tc>, window_params = [{transform_indices = @transform_0, window_bounds = array<i64: 2, 16, 16>}, {transform_indices = @transform_1, window_bounds = array<i64: 2, 17, 15>}]} {
    %cst = arith.constant 0.000000e+00 : f32
    %0 = vector.broadcast %cst : f32 to vector<2x2x15xf32>
    %c0 = arith.constant 0 : index
    %c0_0 = arith.constant 0 : index
    %c0_1 = arith.constant 0 : index
    %1 = vector.load %arg3[%c0, %c0_0, %c0_1] : memref<2x20x15xf32, #tpu.memory_space<vmem>>, vector<2x2x15xf32>
    tpu.vector_store %arg3[%c0, %c0_0, %c0_1], %0 {strides = array<i32>} : memref<2x20x15xf32, #tpu.memory_space<vmem>>, vector<2x2x15xf32>,
    %cst_2 = arith.constant 0.000000e+00 : f32
    %2 = vector.broadcast %cst_2 : f32 to vector<2x2x15xf32>
    %c0_3 = arith.constant 0 : index
    %c18 = arith.constant 18 : index
    %c0_4 = arith.constant 0 : index
    %3 = vector.load %arg3[%c0_3, %c18, %c0_4] : memref<2x20x15xf32, #tpu.memory_space<vmem>>, vector<2x2x15xf32>
    tpu.vector_store %arg3[%c0_3, %c18, %c0_4], %2 {strides = array<i32>} : memref<2x20x15xf32, #tpu.memory_space<vmem>>, vector<2x2x15xf32>,
    %c0_5 = arith.constant 0 : index
    %c0_6 = arith.constant 0 : index
    %c0_7 = arith.constant 0 : index
    %4 = vector.load %arg1[%c0_5, %c0_6, %c0_7] : memref<2x16x16xf32, #tpu.memory_space<vmem>>, vector<2x16x13xf32>
    %c0_8 = arith.constant 0 : index
    %c0_9 = arith.constant 0 : index
    %c3 = arith.constant 3 : index
    %5 = vector.load %arg1[%c0_8, %c0_9, %c3] : memref<2x16x16xf32, #tpu.memory_space<vmem>>, vector<2x16x13xf32>
    %6 = arith.addf %4, %5 : vector<2x16x13xf32>
    %c0_10 = arith.constant 0 : index
    %c0_11 = arith.constant 0 : index
    %c1 = arith.constant 1 : index
    %7 = vector.load %arg1[%c0_10, %c0_11, %c1] : memref<2x16x16xf32, #tpu.memory_space<vmem>>, vector<2x16x13xf32>
    %c0_12 = arith.constant 0 : index
    %c0_13 = arith.constant 0 : index
    %c2 = arith.constant 2 : index
    %8 = vector.load %arg1[%c0_12, %c0_13, %c2] : memref<2x16x16xf32, #tpu.memory_space<vmem>>, vector<2x16x13xf32>
    %9 = arith.addf %7, %8 : vector<2x16x13xf32>
    %cst_14 = arith.constant 3.000000e+00 : f32
    %10 = vector.broadcast %cst_14 : f32 to vector<2x16x13xf32>
    %11 = arith.mulf %10, %9 : vector<2x16x13xf32>
    %12 = arith.addf %6, %11 : vector<2x16x13xf32>
    %c0_15 = arith.constant 0 : index
    %c2_16 = arith.constant 2 : index
    %c1_17 = arith.constant 1 : index
    %13 = vector.load %arg3[%c0_15, %c2_16, %c1_17] : memref<2x20x15xf32, #tpu.memory_space<vmem>>, vector<2x16x13xf32>
    tpu.vector_store %arg3[%c0_15, %c2_16, %c1_17], %12 {strides = array<i32>} : memref<2x20x15xf32, #tpu.memory_space<vmem>>, vector<2x16x13xf32>,
    %c0_18 = arith.constant 0 : index
    %c0_19 = arith.constant 0 : index
    %c0_20 = arith.constant 0 : index
    %14 = vector.load %arg1[%c0_18, %c0_19, %c0_20] : memref<2x16x16xf32, #tpu.memory_space<vmem>>, vector<2x16x1xf32>
    %c0_21 = arith.constant 0 : index
    %c0_22 = arith.constant 0 : index
    %c1_23 = arith.constant 1 : index
    %15 = vector.load %arg1[%c0_21, %c0_22, %c1_23] : memref<2x16x16xf32, #tpu.memory_space<vmem>>, vector<2x16x1xf32>
    %c0_24 = arith.constant 0 : index
    %c0_25 = arith.constant 0 : index
    %c2_26 = arith.constant 2 : index
    %16 = vector.load %arg1[%c0_24, %c0_25, %c2_26] : memref<2x16x16xf32, #tpu.memory_space<vmem>>, vector<2x16x1xf32>
    %cst_27 = arith.constant 3.000000e+00 : f32
    %17 = vector.broadcast %cst_27 : f32 to vector<2x16x1xf32>
    %18 = arith.mulf %17, %14 : vector<2x16x1xf32>
    %cst_28 = arith.constant 3.000000e+00 : f32
    %19 = vector.broadcast %cst_28 : f32 to vector<2x16x1xf32>
    %20 = arith.mulf %19, %15 : vector<2x16x1xf32>
    %21 = arith.addf %18, %20 : vector<2x16x1xf32>
    %22 = arith.addf %21, %16 : vector<2x16x1xf32>
    %c0_29 = arith.constant 0 : index
    %c2_30 = arith.constant 2 : index
    %c0_31 = arith.constant 0 : index
    %23 = vector.load %arg3[%c0_29, %c2_30, %c0_31] : memref<2x20x15xf32, #tpu.memory_space<vmem>>, vector<2x16x1xf32>
    tpu.vector_store %arg3[%c0_29, %c2_30, %c0_31], %22 {strides = array<i32>} : memref<2x20x15xf32, #tpu.memory_space<vmem>>, vector<2x16x1xf32>,
    %c0_32 = arith.constant 0 : index
    %c0_33 = arith.constant 0 : index
    %c13 = arith.constant 13 : index
    %24 = vector.load %arg1[%c0_32, %c0_33, %c13] : memref<2x16x16xf32, #tpu.memory_space<vmem>>, vector<2x16x1xf32>
    %c0_34 = arith.constant 0 : index
    %c0_35 = arith.constant 0 : index
    %c14 = arith.constant 14 : index
    %25 = vector.load %arg1[%c0_34, %c0_35, %c14] : memref<2x16x16xf32, #tpu.memory_space<vmem>>, vector<2x16x1xf32>
    %c0_36 = arith.constant 0 : index
    %c0_37 = arith.constant 0 : index
    %c15 = arith.constant 15 : index
    %26 = vector.load %arg1[%c0_36, %c0_37, %c15] : memref<2x16x16xf32, #tpu.memory_space<vmem>>, vector<2x16x1xf32>
    %cst_38 = arith.constant 3.000000e+00 : f32
    %27 = vector.broadcast %cst_38 : f32 to vector<2x16x1xf32>
    %28 = arith.mulf %27, %25 : vector<2x16x1xf32>
    %29 = arith.addf %24, %28 : vector<2x16x1xf32>
    %cst_39 = arith.constant 3.000000e+00 : f32
    %30 = vector.broadcast %cst_39 : f32 to vector<2x16x1xf32>
    %31 = arith.mulf %30, %26 : vector<2x16x1xf32>
    %32 = arith.addf %29, %31 : vector<2x16x1xf32>
    %c0_40 = arith.constant 0 : index
    %c2_41 = arith.constant 2 : index
    %c14_42 = arith.constant 14 : index
    %33 = vector.load %arg3[%c0_40, %c2_41, %c14_42] : memref<2x20x15xf32, #tpu.memory_space<vmem>>, vector<2x16x1xf32>
    tpu.vector_store %arg3[%c0_40, %c2_41, %c14_42], %32 {strides = array<i32>} : memref<2x20x15xf32, #tpu.memory_space<vmem>>, vector<2x16x1xf32>,
    %c0_43 = arith.constant 0 : index
    %c0_44 = arith.constant 0 : index
    %c0_45 = arith.constant 0 : index
    %34 = vector.load %arg3[%c0_43, %c0_44, %c0_45] : memref<2x20x15xf32, #tpu.memory_space<vmem>>, vector<2x17x15xf32>
    %c0_46 = arith.constant 0 : index
    %c3_47 = arith.constant 3 : index
    %c0_48 = arith.constant 0 : index
    %35 = vector.load %arg3[%c0_46, %c3_47, %c0_48] : memref<2x20x15xf32, #tpu.memory_space<vmem>>, vector<2x17x15xf32>
    %36 = arith.addf %34, %35 : vector<2x17x15xf32>
    %c0_49 = arith.constant 0 : index
    %c1_50 = arith.constant 1 : index
    %c0_51 = arith.constant 0 : index
    %37 = vector.load %arg3[%c0_49, %c1_50, %c0_51] : memref<2x20x15xf32, #tpu.memory_space<vmem>>, vector<2x17x15xf32>
    %c0_52 = arith.constant 0 : index
    %c2_53 = arith.constant 2 : index
    %c0_54 = arith.constant 0 : index
    %38 = vector.load %arg3[%c0_52, %c2_53, %c0_54] : memref<2x20x15xf32, #tpu.memory_space<vmem>>, vector<2x17x15xf32>
    %39 = arith.addf %37, %38 : vector<2x17x15xf32>
    %cst_55 = arith.constant 3.000000e+00 : f32
    %40 = vector.broadcast %cst_55 : f32 to vector<2x17x15xf32>
    %41 = arith.mulf %40, %39 : vector<2x17x15xf32>
    %42 = arith.addf %36, %41 : vector<2x17x15xf32>
    %cst_56 = arith.constant 6.250000e-02 : f32
    %43 = vector.broadcast %cst_56 : f32 to vector<2x17x15xf32>
    %44 = arith.mulf %43, %42 : vector<2x17x15xf32>
    %c0_57 = arith.constant 0 : index
    %c0_58 = arith.constant 0 : index
    %c0_59 = arith.constant 0 : index
    %45 = vector.load %arg2[%c0_57, %c0_58, %c0_59] : memref<2x17x15xf32, #tpu.memory_space<vmem>>, vector<2x17x15xf32>
    tpu.vector_store %arg2[%c0_57, %c0_58, %c0_59], %44 {strides = array<i32>} : memref<2x17x15xf32, #tpu.memory_space<vmem>>, vector<2x17x15xf32>,
    return
  }
  func.func @transform_0(%arg0: i32) -> (i32, i32, i32) {
    %c0_i32 = arith.constant 0 : i32
    %c0_i32_0 = arith.constant 0 : i32
    %c0_i32_1 = arith.constant 0 : i32
    return %arg0, %c0_i32, %c0_i32_0 : i32, i32, i32
  }
  func.func @transform_1(%arg0: i32) -> (i32, i32, i32) {
    %c0_i32 = arith.constant 0 : i32
    %c0_i32_0 = arith.constant 0 : i32
    %c0_i32_1 = arith.constant 0 : i32
    return %arg0, %c0_i32, %c0_i32_0 : i32, i32, i32
  }
}

</mosaic_0001>

<bundles_post_ra>
// kernel: tpu_custom_call.1
= control target key start
LH: loop header
LB: loop body
LE: loop exit
PB: predicated region body
PF: predicated region fallthrough
CT: control target
= control target key end

     0   :  { %6 = vsyncpa [#allocation4], 0  ;;  %s816_s0 = inlined_call_operand.hbm [shape: f32[8,16,16], index: 0, kind: input, shape index: {}]   ;;  %s817_s1 = inlined_call_operand.vmem [shape: f32[8,17,15], index: 1, kind: output, shape index: {}]  }
   0x1   :  { %8 = vsyncpa [#allocation4 + $0x1], 0  ;;  %s629_s6 = smov 0   ;;  %s631_s7 = smov 0  }
   0x2   :  { %s633_s8 = smov 0   ;;  %s635_s9 = smov 0  }
   0x3 LB: > { %s483_s10 = sadd.s32 4294967295, %s610_s9   ;;  %s649_s11 = sadd.s32 1, %s610_s9   ;;  %s610_s9 = sphi %s635_s9, %s824_s9   ;;  %s606_s8 = sphi %s633_s8, %s823_s8   ;;  %s602_s7 = sphi %s631_s7, %s822_s7   ;;  %s598_s6 = sphi %s629_s6, %s821_s6  }
   0x4   : > { %s18_s12 = ssub.s32 %s610_s9, %s649_s11  ;;  %s21_s13 = sadd.s32 1, %s606_s8 }
   0x5   : > { %p19_p0 = scmp.eq.s32.totalorder %s18_s12, 0  ;;  %p28_p1 = scmp.ne.s32.totalorder %s606_s8, %s602_s7 }
   0x6   : > { %p29_p2 = scmp.eq.s32.totalorder %s610_s9, 0  ;;  %p34_p3 = scmp.ne.s32.totalorder %s602_s7, %s598_s6 }
   0x7   : > { %s659_s14 = scalar_select %p19_p0, %s606_s8, %s21_s13  }
   0x8   : > { %p661_p4 = por %p29_p2, %p28_p1  ;;  %p35_p5 = scmp.eq.s32.totalorder %s483_s10, 0 }
   0x9   : > { %p506_p6 = scmp.lt.s32.totalorder %s610_s9, 4  ;;  %s84_s17 = sand.u32 1, %s606_s8  }
   0xa   : > { %p668_p7 = por %p35_p5, %p34_p3  ;;  %s487_s18 = sshll.u32 %s84_s17, 5 }
   0xb   : > { %s498_s19 = sshll.u32 %s610_s9, 5  ;;  %s88_s23 = scalar_lea.vmem [#allocation3], %s487_s18 }
   0xc   : > { %s94_s22 = scalar_lea.hbm %s816_s0, %s498_s19  ;;  %s97_s24 = sshll.u32 %s88_s23, 4  ;;  %s98_s24 = int_to_ptr.vmem [resolvable:$true] %s97_s24 }
   0xd   : > { %s95_s25 = sshll.u32 %s94_s22, 4  ;;  %p679_p8 = pnand %p506_p6, %p661_p4  ;;  %s96_s25 = int_to_ptr.hbm [resolvable:$true] %s95_s25 }
   0xe   : > { %p491_p9 = scmp.ge.s32.totalorder %s610_s9, 1  ;;  %s85_s27 = scalar_lea.sflag [#allocation4], %s84_s17 }
   0xf   : > { %s546_s28 = sshra.s32 %s96_s25, 4  ;;  %p550_p11 = pneg %p679_p8  ;;  %s547_s28 = int_to_ptr.hbm [resolvable:$true] %s546_s28 }
  0x10   : > { %s548_s29 = scalar_lea.hbm %s547_s28, 32  ;;  %s553_s3 = scalar_lea.hbm %s816_s0, 128 }
  0x11   : > { %p549_p10 = scmp.ne.s32.totalorder %s547_s28, %s548_s29  ;;  %p554_p0 = scmp.lt.s32.totalorder %s547_s28, %s816_s0 }
  0x12   : > { %p555_p1 = scmp.lt.s32.totalorder %s553_s3, %s548_s29 }
  0x13   : > { %p551_p12 = pnand %p550_p11, %p549_p10 }
  0x14   : > { %p556_p2 = por %p555_p1, %p554_p0 }
  0x15   : > { %p552_p13 = pneg %p551_p12 }
  0x17   : > { %p557_p3 = pnand %p556_p2, %p552_p13 }
  0x19   : > { %560 = shalt.err (!%p557_p3)
}
  0x1a   : > { %s612_s6 = smov 128   ;;  %s613_s12 = smov 8  }
  0x1b   : > { %505 = dma.hbm_to_vmem [thread:$0]  (!%p679_p8), %s96_s25, 512, %s98_s24, %s85_s27, %s612_s6, %s612_s6, %s613_s12  }
  0x1c   : > { %p105_p4 = scmp.lt.s32.totalorder %s610_s9, 5 }
  0x1e   : > { %p106_p5 = pnand %p491_p9, %p105_p4 }
  0x1f   : > { %s111_s13 = sand.u32 (!%p106_p5), 1, %s602_s7  }
  0x20   : > { %109 = sbr.rel (%p106_p5) target bundleno = 436 (0x1b4), region = 24  ;;  %s492_s15 = sshll.u32 (!%p106_p5), %s111_s13, 5 }
  0x21   : > { %s112_s17 = scalar_lea.sflag (!%p106_p5), [#allocation4], %s111_s13  ;;  %s115_s18 = scalar_lea.vmem (!%p106_p5), [#allocation3], %s492_s15 }
  0x25   : > { %593 = dma.done.wait (%p668_p7), %s112_s17, 512  }
  0x26   : > { %595 = vsyncadd (%p668_p7), %s112_s17, 4294966784  ;;  %v702_v0 = vld [vmem:[%s115_s18 + $0x10] sm:$0xff]  ;;  %v149_v1 = vld [vmem:[%s115_s18] sm:$0xff]  ;;  %s614_s19 = smov 127   ;;  %s615_s20 = smov 125   ;;  %vm144_vm0 = vcmask 115712  }
  0x27   : > { %177 = vrot.lane.b32.xlu1 %v702_v0, %s614_s19  ;;  %173 = vrot.lane.b32.xlu0 %v149_v1, %s614_s19  ;;  %v707_v2 = vld [vmem:[%s115_s18 + $0x18] sm:$0xff]  ;;  %v709_v3 = vld [vmem:[%s115_s18 + $0x8] sm:$0xff]  ;;  %v723_v5 = vmul.f32 3.0, %v149_v1  ;;  %v726_v6 = vmul.f32 3.0, %v702_v0  ;;  %s616_s16 = smov 126   ;;  %s617_s21 = smov 1  }
  0x28   : > { %157 = vrot.lane.b32.xlu2 %v149_v1, %s615_s20  ;;  %v717_v4 = vmul.f32 3.0, %v709_v3  ;;  %v294_v7 = vmul.f32 3.0, %v707_v2  ;;  %vm229_vm1 = vcmask 113672   ;;  %v618_v62 = vmov 0.0   ;;  %s493_s22 = sshll.u32 %s483_s10, 1 }
  0x29   : > { %146 = vst.msk [vmem:[#allocation2 + $0x18] sm:$0x3] %vm144_vm0, %v618_v62  ;;  %vm282_vm2 = vcmask 7168   ;;  %vm347_vm3 = vcmask 121968   ;;  %p138_p6 = scmp.lt.s32.totalorder %s493_s22, 7  ;;  %vm406_vm4 = vcmask 121856  }
  0x2a   : > { %148 = vst.msk [vmem:[#allocation2 + $0x2a] sm:$0x3] %vm144_vm0, %v618_v62  ;;  %vm409_vm5 = vcmask 114688  }
  0x2b   : > { %145 = vst.msk [vmem:[#allocation2] sm:$0x3] %vm144_vm0, %v618_v62  ;;  %s826_s22 = smov (!%p138_p6, %s493_s22), 7 }
  0x2c   : > { %147 = vst.msk [vmem:[#allocation2 + $0x12] sm:$0x3] %vm144_vm0, %v618_v62  ;;  %s499_s9 = smul.u32 24, %s826_s22 }
  0x2e   : > { %s142_s24 = scalar_lea.vmem %s817_s1, %s499_s9 }
  0x2f   : > { %179 = vrot.lane.b32.xlu1 %v707_v2, %s614_s19  ;;  %175 = vrot.lane.b32.xlu0 %v709_v3, %s614_s19 }
  0x30   : > { %159 = vrot.lane.b32.xlu2 %v709_v3, %s615_s20 }
  0x37   : > { %163 = vrot.lane.b32.xlu1 %v707_v2, %s615_s20  ;;  %161 = vrot.lane.b32.xlu0 %v702_v0, %s615_s20 }
  0x38   : > { %301 = vrot.lane.b32.xlu2 %v717_v4, %s614_s19 }
  0x3f   : > { %299 = vrot.lane.b32.xlu1 %v723_v5, %s614_s19  ;;  %305 = vrot.lane.b32.xlu0 %v294_v7, %s614_s19 }
  0x40   : > { %303 = vrot.lane.b32.xlu2 %v726_v6, %s614_s19 }
  0x47   : > { %315 = vrot.lane.b32.xlu1 %v723_v5, %s616_s16 }
  0x48   : > { %317 = vrot.lane.b32.xlu2 %v717_v4, %s616_s16 }
  0x82   : > { %v158_v25 = vpop.permute.xlu2 %157 }
  0x83   : > { %v169_v30 = vadd.f32 %v158_v25, %v149_v1 }
  0x8a   : > { %v160_v26 = vpop.permute.xlu2 %159 }
  0x8b   : > { %v170_v37 = vadd.f32 %v160_v26, %v709_v3 }
  0x92   : > { %v302_v27 = vpop.permute.xlu2 %301 }
  0x93   : > { %v312_v52 = vadd.f32 %v302_v27, %v709_v3 }
  0x99   : > { %v178_v8 = vpop.permute.xlu1 %177  ;;  %v174_v9 = vpop.permute.xlu0 %173 }
  0x9a   : > { %v185_v10 = vadd.f32 %v174_v9, %v149_v1  ;;  %v187_v18 = vadd.f32 %v178_v8, %v702_v0  ;;  %v304_v28 = vpop.permute.xlu2 %303 }
  0x9b   : > { %v313_v53 = vadd.f32 %v304_v28, %v702_v0  ;;  %v360_v28 = vld [vmem:[#allocation2 + $0x13] sm:$0x1] }
  0x9c   : > { %v189_v11 = vmul.f32 3.0, %v185_v10  ;;  %v191_v20 = vmul.f32 3.0, %v187_v18  ;;  %v378_v18 = vld [vmem:[#allocation2 + $0x12] sm:$0x1] }
  0x9e   : > { %197 = vrot.lane.b32.xlu2 %v189_v11, %s614_s19 }
  0xa1   : > { %v180_v12 = vpop.permute.xlu1 %179  ;;  %v176_v13 = vpop.permute.xlu0 %175 }
  0xa2   : > { %v188_v14 = vadd.f32 %v180_v12, %v707_v2  ;;  %v186_v15 = vadd.f32 %v176_v13, %v709_v3  ;;  %v318_v29 = vpop.permute.xlu2 %317 }
  0xa3   : > { %v328_v55 = vadd.f32 %v318_v29, %v312_v52 }
  0xa4   : > { %v192_v16 = vmul.f32 3.0, %v188_v14  ;;  %v190_v17 = vmul.f32 3.0, %v186_v15 }
  0xa6   : > { %203 = vrot.lane.b32.xlu1 %v192_v16, %s614_s19  ;;  %199 = vrot.lane.b32.xlu0 %v190_v17, %s614_s19  ;;  %v381_v16 = vld [vmem:[#allocation2 + $0x2a] sm:$0x1] }
  0xa7   : > { %246 = vrot.lane.b32.xlu2 %v723_v5, %s614_s19 }
  0xa9   : > { %v164_v19 = vpop.permute.xlu1 %163  ;;  %v162_v33 = vpop.permute.xlu0 %161 }
  0xaa   : > { %v172_v38 = vadd.f32 %v164_v19, %v707_v2  ;;  %v171_v46 = vadd.f32 %v162_v33, %v702_v0 }
  0xae   : > { %321 = vrot.lane.b32.xlu1 %v294_v7, %s616_s16  ;;  %201 = vrot.lane.b32.xlu0 %v191_v20, %s614_s19 }
  0xaf   : > { %252 = vrot.lane.b32.xlu2 %v294_v7, %s614_s19 }
  0xb1   : > { %v300_v21 = vpop.permute.xlu1 %299  ;;  %v306_v35 = vpop.permute.xlu0 %305 }
  0xb2   : > { %v311_v22 = vadd.f32 %v300_v21, %v149_v1  ;;  %v314_v47 = vadd.f32 %v306_v35, %v707_v2 }
  0xb6   : > { %319 = vrot.lane.b32.xlu0 %v726_v6, %s616_s16  ;;  %250 = vrot.lane.b32.xlu1 %v726_v6, %s614_s19 }
  0xb7   : > { %272 = vrot.lane.b32.xlu2 %v707_v2, %s616_s16 }
  0xb9   : > { %v316_v23 = vpop.permute.xlu1 %315 }
  0xba   : > { %v327_v24 = vadd.f32 %v316_v23, %v311_v22 }
  0xbe   : > { %248 = vrot.lane.b32.xlu0 %v717_v4, %s614_s19  ;;  %268 = vrot.lane.b32.xlu1 %v709_v3, %s616_s16 }
  0xbf   : > { %335 = vrot.lane.b32.xlu2 %v327_v24, %s617_s21 }
  0xc6   : > { %266 = vrot.lane.b32.xlu0 %v149_v1, %s616_s16  ;;  %270 = vrot.lane.b32.xlu1 %v702_v0, %s616_s16 }
  0xf8   : > { %v198_v31 = vpop.permute.xlu2 %197 }
  0xf9   : > { %v209_v32 = vadd.f32 %v198_v31, %v169_v30  ;;  %v363_v31 = vld [vmem:[#allocation2 + $0x2b] sm:$0x1] }
  0xfb   : > { %217 = vrot.lane.b32.xlu2 %v209_v32, %s617_s21 }
 0x101   : > { %v247_v34 = vpop.permute.xlu2 %246 }
 0x102   : > { %v258_v59 = vadd.f32 %v723_v5, %v247_v34 }
 0x109   : > { %v253_v36 = vpop.permute.xlu2 %252 }
 0x10a   : > { %v261_v41 = vadd.f32 %v294_v7, %v253_v36 }
 0x111   : > { %v273_v44 = vpop.permute.xlu2 %272 }
 0x112   : > { %v281_v45 = vadd.f32 %v273_v44, %v261_v41 }
 0x118   : > { %v204_v39 = vpop.permute.xlu1 %203  ;;  %v200_v40 = vpop.permute.xlu0 %199 }
 0x119   : > { %v212_v42 = vadd.f32 %v204_v39, %v172_v38  ;;  %v210_v43 = vadd.f32 %v200_v40, %v170_v37  ;;  %v336_v58 = vpop.permute.xlu2 %335 }
 0x11b   : > { %223 = vrot.lane.b32.xlu1 %v212_v42, %s617_s21  ;;  %219 = vrot.lane.b32.xlu0 %v210_v43, %s617_s21 }
 0x120   : > { %v322_v48 = vpop.permute.xlu1 %321  ;;  %v202_v49 = vpop.permute.xlu0 %201 }
 0x121   : > { %v330_v50 = vadd.f32 %v322_v48, %v314_v47  ;;  %v211_v51 = vadd.f32 %v202_v49, %v171_v46 }
 0x123   : > { %341 = vrot.lane.b32.xlu2 %v330_v50, %s617_s21  ;;  %221 = vrot.lane.b32.xlu0 %v211_v51, %s617_s21 }
 0x128   : > { %v320_v54 = vpop.permute.xlu0 %319  ;;  %v251_v0 = vpop.permute.xlu1 %250 }
 0x129   : > { %v329_v56 = vadd.f32 %v320_v54, %v313_v53  ;;  %v260_v9 = vadd.f32 %v726_v6, %v251_v0 }
 0x12b   : > { %337 = vrot.lane.b32.xlu0 %v328_v55, %s617_s21  ;;  %339 = vrot.lane.b32.xlu1 %v329_v56, %s617_s21 }
 0x130   : > { %v249_v57 = vpop.permute.xlu0 %248  ;;  %v269_v1 = vpop.permute.xlu1 %268 }
 0x131   : > { %v259_v3 = vadd.f32 %v717_v4, %v249_v57 }
 0x133   : > { %v279_v8 = vadd.f32 %v269_v1, %v259_v3 }
 0x138   : > { %v267_v60 = vpop.permute.xlu0 %266  ;;  %v271_v2 = vpop.permute.xlu1 %270 }
 0x139   : > { %v278_v61 = vadd.f32 %v267_v60, %v258_v59  ;;  %v280_v11 = vadd.f32 %v271_v2, %v260_v9 }
 0x155   : > { %v218_v63 = vpop.permute.xlu2 %217 }
 0x156   : > { %230 = vst.msk [vmem:[#allocation2 + $0x2] sm:$0xff] %vm229_vm1, %v218_v63 }
 0x157   : > { %283 = vst.msk [vmem:[#allocation2 + $0x2] sm:$0xff] %vm282_vm2, %v278_v61 }
 0x158   : > { %348 = vst.msk [vmem:[#allocation2 + $0x2] sm:$0xff] %vm347_vm3, %v336_v58 }
 0x15f   : > { %v376_v6 = vld [vmem:[#allocation2 + $0x2] sm:$0xff] }
 0x160   : > { %v370_v14 = vld [vmem:[#allocation2 + $0x1] sm:$0xff] }
 0x161   : > { %v382_v19 = vadd.f32 %v376_v6, %v370_v14  ;;  %v352_v23 = vld [vmem:[#allocation2] sm:$0xff] }
 0x163   : > { %v388_v40 = vmul.f32 3.0, %v382_v19 }
 0x17d   : > { %v342_v10 = vpop.permute.xlu2 %341 }
 0x18d   : > { %v224_v5 = vpop.permute.xlu1 %223  ;;  %v220_v7 = vpop.permute.xlu0 %219 }
 0x18e   : > { %233 = vst.msk [vmem:[#allocation2 + $0x22] sm:$0xff] %vm229_vm1, %v224_v5 }
 0x18f   : > { %286 = vst.msk [vmem:[#allocation2 + $0x22] sm:$0xff] %vm282_vm2, %v281_v45 }
 0x190   : > { %231 = vst.msk [vmem:[#allocation2 + $0xa] sm:$0xff] %vm229_vm1, %v220_v7 }
 0x191   : > { %284 = vst.msk [vmem:[#allocation2 + $0xa] sm:$0xff] %vm282_vm2, %v279_v8 }
 0x192   : > { %351 = vst.msk [vmem:[#allocation2 + $0x22] sm:$0xff] %vm347_vm3, %v342_v10 }
 0x195   : > { %v222_v12 = vpop.permute.xlu0 %221 }
 0x196   : > { %232 = vst.msk [vmem:[#allocation2 + $0x1a] sm:$0xff] %vm229_vm1, %v222_v12 }
 0x197   : > { %285 = vst.msk [vmem:[#allocation2 + $0x1a] sm:$0xff] %vm282_vm2, %v280_v11 }
 0x199   : > { %v375_v15 = vld [vmem:[#allocation2 + $0x29] sm:$0x1]  ;;  %v357_v29 = vld [vmem:[#allocation2 + $0x28] sm:$0x1] }
 0x19a   : > { %v380_v17 = vld [vmem:[#allocation2 + $0x22] sm:$0xff]  ;;  %v387_v27 = vadd.f32 %v381_v16, %v375_v15  ;;  %v369_v55 = vadd.f32 %v363_v31, %v357_v29 }
 0x19b   : > { %v362_v30 = vld [vmem:[#allocation2 + $0x23] sm:$0xff] }
 0x19c   : > { %v393_v48 = vmul.f32 3.0, %v387_v27 }
 0x19d   : > { %v340_v4 = vpop.permute.xlu1 %339  ;;  %v338_v13 = vpop.permute.xlu0 %337 }
 0x19e   : > { %350 = vst.msk [vmem:[#allocation2 + $0x1a] sm:$0xff] %vm347_vm3, %v340_v4  ;;  %v399_v61 = vadd.f32 %v393_v48, %v369_v55 }
 0x19f   : > { %349 = vst.msk [vmem:[#allocation2 + $0xa] sm:$0xff] %vm347_vm3, %v338_v13 }
 0x1a0   : > { %v405_v2 = vmul.f32 0.0625, %v399_v61 }
 0x1a2   : > { %413 = vst.msk [vmem:[%s142_s24 + $0x28] sm:$0x1] %vm409_vm5, %v405_v2 }
 0x1a5   : > { %v355_v20 = vld [vmem:[#allocation2 + $0x18] sm:$0xff]  ;;  %v356_v21 = vld [vmem:[#allocation2 + $0x20] sm:$0xff] }
 0x1a6   : > { %v361_v22 = vld [vmem:[#allocation2 + $0x1b] sm:$0xff]  ;;  %v358_v34 = vld [vmem:[#allocation2 + $0x3] sm:$0xff]  ;;  %v354_v36 = vld [vmem:[#allocation2 + $0x10] sm:$0x1]  ;;  %v368_v41 = vadd.f32 %v362_v30, %v356_v21 }
 0x1a7   : > { %v373_v24 = vld [vmem:[#allocation2 + $0x19] sm:$0xff]  ;;  %v374_v25 = vld [vmem:[#allocation2 + $0x21] sm:$0xff]  ;;  %v367_v35 = vadd.f32 %v361_v22, %v355_v20  ;;  %v364_v37 = vadd.f32 %v358_v34, %v352_v23  ;;  %v371_v38 = vld [vmem:[#allocation2 + $0x9] sm:$0xff]  ;;  %v366_v53 = vadd.f32 %v360_v28, %v354_v36 }
 0x1a8   : > { %v379_v26 = vld [vmem:[#allocation2 + $0x1a] sm:$0xff]  ;;  %v386_v33 = vadd.f32 %v380_v17, %v374_v25  ;;  %v372_v39 = vld [vmem:[#allocation2 + $0x11] sm:$0x1]  ;;  %v353_v44 = vld [vmem:[#allocation2 + $0x8] sm:$0xff] }
 0x1a9   : > { %v385_v32 = vadd.f32 %v379_v26, %v373_v24  ;;  %v359_v45 = vld [vmem:[#allocation2 + $0xb] sm:$0xff]  ;;  %v384_v47 = vadd.f32 %v378_v18, %v372_v39  ;;  %v394_v50 = vadd.f32 %v388_v40, %v364_v37 }
 0x1aa   : > { %v392_v43 = vmul.f32 3.0, %v386_v33  ;;  %v377_v46 = vld [vmem:[#allocation2 + $0xa] sm:$0xff]  ;;  %v365_v56 = vadd.f32 %v359_v45, %v353_v44 }
 0x1ab   : > { %v391_v42 = vmul.f32 3.0, %v385_v32  ;;  %v383_v49 = vadd.f32 %v377_v46, %v371_v38  ;;  %v390_v54 = vmul.f32 3.0, %v384_v47  ;;  %v400_v58 = vmul.f32 0.0625, %v394_v50 }
 0x1ac   : > { %v398_v52 = vadd.f32 %v392_v43, %v368_v41 }
 0x1ad   : > { %v397_v51 = vadd.f32 %v391_v42, %v367_v35  ;;  %v389_v57 = vmul.f32 3.0, %v383_v49  ;;  %v396_v60 = vadd.f32 %v390_v54, %v366_v53  ;;  %407 = vst.msk [vmem:[%s142_s24] sm:$0xff] %vm406_vm4, %v400_v58 }
 0x1ae   : > { %v404_v63 = vmul.f32 0.0625, %v398_v52 }
 0x1af   : > { %v403_v59 = vmul.f32 0.0625, %v397_v51  ;;  %v395_v62 = vadd.f32 %v389_v57, %v365_v56  ;;  %v402_v0 = vmul.f32 0.0625, %v396_v60 }
 0x1b0   : > { %412 = vst.msk [vmem:[%s142_s24 + $0x20] sm:$0xff] %vm406_vm4, %v404_v63 }
 0x1b1   : > { %411 = vst.msk [vmem:[%s142_s24 + $0x18] sm:$0xff] %vm406_vm4, %v403_v59  ;;  %v401_v1 = vmul.f32 0.0625, %v395_v62 }
 0x1b2   : > { %410 = vst.msk [vmem:[%s142_s24 + $0x10] sm:$0x1] %vm409_vm5, %v402_v0 }
 0x1b3   : > { %408 = vst.msk [vmem:[%s142_s24 + $0x8] sm:$0xff] %vm406_vm4, %v401_v1 }
 0x1b4 PF: > { %p11_p7 = scmp.ge.s32.totalorder %s649_s11, 6   ;;  %s821_s6 = smov %s602_s7 }
 0x1b5   : > { %s822_s7 = smov %s606_s8  ;;  %s823_s8 = smov %s659_s14 }
 0x1b6   : > { %s824_s9 = smov %s649_s11  ;;  %13 = sbr.rel (!%p11_p7) target bundleno = 3 (0x3), region = 64 }
 0x1bb   :  { %438 = vsyncpa [#allocation4], 1 }
 0x1bc   :  { %440 = vsyncpa [#allocation4 + $0x1], 1 }

</bundles_post_ra>
